<compile_context>
chip_gen: v7x
topology: tpu7x:2x2x1
jax: 0.10.0
libtpu: 0.0.40
codegen_flags: <defaults>
</compile_context>

<pallas_src>
import math
from functools import partial

import jax
import jax.numpy as jnp
from jax.experimental import pallas as pl
from jax.experimental.pallas import tpu as pltpu


_LANE = 128
_MIB = 1024 * 1024
_TILE_BYTES_3OP = 4 * _MIB      # grad / prox / fused: 2 inputs + 1 wide output streamed
_TILE_BYTES_2OP = 6 * _MIB      # energy-only: 2 inputs streamed, tiny partials out
_MIN_SPLIT_BYTES = 2 * _MIB     # split slabs above this into >= 2 grid steps (v7x megacore)
_VMEM_FLOOR = 16 * _MIB
_VMEM_CAP = 48 * _MIB           # leaves headroom inside v7x's 64 MiB physical VMEM
_VMEM_MARGIN = 8 * _MIB


# ---------------------------------------------------------------------------
# Tiling plan: flatten to a contiguous (rows, width) slab with a wide,
# lane-dense last dim; tile full-width row bands.
# ---------------------------------------------------------------------------
def _pick_width(bulk):
    for cand in (4096, 2048, 1024, 512, 256, 128):
        if bulk % cand == 0:
            return cand
    return _LANE  # unreachable: bulk is a multiple of 128 by construction


def _row_tiling(rows, width, itemsize, target_bytes):
    """Row-band height (multiple of the sublane quantum) of ~target_bytes."""
    q = max(8, 32 // max(1, itemsize))          # 8 rows f32, 16 bf16, 32 int8
    slab_bytes = rows * width * itemsize
    max_r = max(q, (target_bytes // (width * itemsize)) // q * q)
    if rows <= max_r:
        if slab_bytes > _MIN_SPLIT_BYTES and rows >= 2 * q:
            # Split medium slabs into >= 2 blocks so the "parallel" grid can
            # shard across the two TensorCores of a v7x chip (no-op on v5e/v6e).
            tile_r = pl.cdiv(pl.cdiv(rows, 2), q) * q
        else:
            tile_r = rows                        # full-dim block (always legal)
    else:
        # Prefer an exact divisor close to max_r; NEVER fall back to a tiny
        # divisor (pathological shapes would explode the grid).  If nothing
        # >= max_r/2 divides `rows`, keep max_r and accept a ragged last block.
        tile_r = max_r
        r = max_r
        floor_r = max(q, (max_r // 2 // q) * q)
        while r >= floor_r:
            if rows % r == 0:
                tile_r = r
                break
            r -= q
    grid_r = pl.cdiv(rows, tile_r)
    return tile_r, grid_r


def _vmem_limit(n_streams, tile_r, width, itemsize):
    """Explicit scoped-VMEM budget for the double-buffered working set."""
    ws = n_streams * 2 * tile_r * width * itemsize
    return int(min(_VMEM_CAP, max(_VMEM_FLOOR, ws + _VMEM_MARGIN)))


# ---------------------------------------------------------------------------
# Pallas kernels
# ---------------------------------------------------------------------------
def _grad_kernel(x_ref, f_ref, o_ref):
    xv = x_ref[...].astype(jnp.float32)
    fv = f_ref[...].astype(jnp.float32)
    o_ref[...] = (xv - fv).astype(o_ref.dtype)


def _prox_kernel(coef_ref, x_ref, f_ref, o_ref):
    # coef_ref (SMEM, traced): [tau/(1+tau), 1/(1+tau)] -> no per-element
    # divide and no recompile when tau changes per solver iteration.
    a = coef_ref[0]
    b = coef_ref[1]
    xv = x_ref[...].astype(jnp.float32)
    fv = f_ref[...].astype(jnp.float32)
    o_ref[...] = (xv * b + fv * a).astype(o_ref.dtype)


def _mask_tail_rows(sq, valid_rows):
    # Zero out rows past the logical extent of the slab (ragged last block).
    i = pl.program_id(0)
    tile_r = sq.shape[0]
    rem = valid_rows - i * tile_r
    row_ids = jax.lax.broadcasted_iota(jnp.int32, sq.shape, 0)
    return jnp.where(row_ids < rem, sq, 0.0)


def _energy_kernel(x_ref, f_ref, e_ref, *, valid_rows=None):
    d = x_ref[...].astype(jnp.float32) - f_ref[...].astype(jnp.float32)
    sq = d * d
    if valid_rows is not None:              # static (trace-time) decision
        sq = _mask_tail_rows(sq, valid_rows)
    # Lane-dense per-tile partials: sublane reduce only; cross-lane and
    # cross-tile reduction happens in the trailing jnp.sum outside the kernel.
    e_ref[...] = jnp.sum(sq, axis=0, keepdims=True)


def _grad_energy_kernel(x_ref, f_ref, g_ref, e_ref, *, valid_rows=None):
    xv = x_ref[...].astype(jnp.float32)
    fv = f_ref[...].astype(jnp.float32)
    d = xv - fv
    g_ref[...] = d.astype(g_ref.dtype)
    sq = d * d
    if valid_rows is not None:
        sq = _mask_tail_rows(sq, valid_rows)
    e_ref[...] = jnp.sum(sq, axis=0, keepdims=True)


# ---------------------------------------------------------------------------
# pallas_call wrappers (jitted; shapes are the only compile keys)
# ---------------------------------------------------------------------------
def _bulk_slabs(flat_x, flat_f, bulk, tail, rows, width):
    x2 = (flat_x[:bulk] if tail else flat_x).reshape(rows, width)
    f2 = (flat_f[:bulk] if tail else flat_f).reshape(rows, width)
    return x2, f2


@jax.jit
def _grad_impl(x, f):
    numel = math.prod(x.shape)
    flat_x = x.reshape(-1)
    flat_f = f.reshape(-1)
    bulk = (numel // _LANE) * _LANE
    tail = numel - bulk
    itemsize = x.dtype.itemsize

    outs = []
    if bulk:
        width = _pick_width(bulk)
        rows = bulk // width
        tile_r, grid_r = _row_tiling(rows, width, itemsize, _TILE_BYTES_3OP)
        x2, f2 = _bulk_slabs(flat_x, flat_f, bulk, tail, rows, width)
        blk = pl.BlockSpec((tile_r, width), lambda i: (i, 0))
        out = pl.pallas_call(
            _grad_kernel,
            out_shape=jax.ShapeDtypeStruct((rows, width), x.dtype),
            grid_spec=pltpu.PrefetchScalarGridSpec(
                num_scalar_prefetch=0, grid=(grid_r,),
                in_specs=[blk, blk], out_specs=blk),
            compiler_params=pltpu.CompilerParams(
                dimension_semantics=("parallel",),
                vmem_limit_bytes=_vmem_limit(3, tile_r, width, itemsize)),
        )(x2, f2)
        if not tail:
            return out.reshape(x.shape)       # free reshape, no copies
        outs.append(out.reshape(-1))
    if tail:  # < 128 trailing elements: plain jnp, no pad/copy of the bulk
        xt = flat_x[bulk:].astype(jnp.float32)
        ft = flat_f[bulk:].astype(jnp.float32)
        outs.append((xt - ft).astype(x.dtype))
    return jnp.concatenate(outs).reshape(x.shape)


@jax.jit
def _prox_impl(x, f, coef):
    numel = math.prod(x.shape)
    flat_x = x.reshape(-1)
    flat_f = f.reshape(-1)
    bulk = (numel // _LANE) * _LANE
    tail = numel - bulk
    itemsize = x.dtype.itemsize

    outs = []
    if bulk:
        width = _pick_width(bulk)
        rows = bulk // width
        tile_r, grid_r = _row_tiling(rows, width, itemsize, _TILE_BYTES_3OP)
        x2, f2 = _bulk_slabs(flat_x, flat_f, bulk, tail, rows, width)
        blk = pl.BlockSpec((tile_r, width), lambda i: (i, 0))
        out = pl.pallas_call(
            _prox_kernel,
            out_shape=jax.ShapeDtypeStruct((rows, width), x.dtype),
            grid_spec=pltpu.PrefetchScalarGridSpec(
                num_scalar_prefetch=0, grid=(grid_r,),
                in_specs=[pl.BlockSpec(memory_space=pltpu.MemorySpace.SMEM),
                          blk, blk],
                out_specs=blk),
            compiler_params=pltpu.CompilerParams(
                dimension_semantics=("parallel",),
                vmem_limit_bytes=_vmem_limit(3, tile_r, width, itemsize)),
        )(coef, x2, f2)
        if not tail:
            return out.reshape(x.shape)
        outs.append(out.reshape(-1))
    if tail:
        a = coef[0]
        b = coef[1]
        xt = flat_x[bulk:].astype(jnp.float32)
        ft = flat_f[bulk:].astype(jnp.float32)
        outs.append((xt * b + ft * a).astype(x.dtype))
    return jnp.concatenate(outs).reshape(x.shape)


@jax.jit
def _energy_impl(x, f):
    numel = math.prod(x.shape)
    flat_x = x.reshape(-1)
    flat_f = f.reshape(-1)
    bulk = (numel // _LANE) * _LANE
    tail = numel - bulk
    itemsize = x.dtype.itemsize

    total = jnp.float32(0.0)
    if bulk:
        width = _pick_width(bulk)
        rows = bulk // width
        # energy streams only 2 operands -> larger input tiles in same VMEM
        tile_r, grid_r = _row_tiling(rows, width, itemsize, _TILE_BYTES_2OP)
        x2, f2 = _bulk_slabs(flat_x, flat_f, bulk, tail, rows, width)
        valid = rows if (rows % tile_r) else None
        blk = pl.BlockSpec((tile_r, width), lambda i: (i, 0))
        partials = pl.pallas_call(
            partial(_energy_kernel, valid_rows=valid),
            out_shape=jax.ShapeDtypeStruct((grid_r, width), jnp.float32),
            grid_spec=pltpu.PrefetchScalarGridSpec(
                num_scalar_prefetch=0, grid=(grid_r,),
                in_specs=[blk, blk],
                out_specs=pl.BlockSpec((1, width), lambda i: (i, 0))),
            compiler_params=pltpu.CompilerParams(
                dimension_semantics=("parallel",),
                vmem_limit_bytes=_vmem_limit(2, tile_r, width, itemsize)),
        )(x2, f2)
        total = total + jnp.sum(partials)
    if tail:
        dt = flat_x[bulk:].astype(jnp.float32) - flat_f[bulk:].astype(jnp.float32)
        total = total + jnp.sum(dt * dt)
    return 0.5 * total


@jax.jit
def _grad_energy_impl(x, f):
    numel = math.prod(x.shape)
    flat_x = x.reshape(-1)
    flat_f = f.reshape(-1)
    bulk = (numel // _LANE) * _LANE
    tail = numel - bulk
    itemsize = x.dtype.itemsize

    outs = []
    total = jnp.float32(0.0)
    if bulk:
        width = _pick_width(bulk)
        rows = bulk // width
        tile_r, grid_r = _row_tiling(rows, width, itemsize, _TILE_BYTES_3OP)
        x2, f2 = _bulk_slabs(flat_x, flat_f, bulk, tail, rows, width)
        valid = rows if (rows % tile_r) else None
        blk = pl.BlockSpec((tile_r, width), lambda i: (i, 0))
        g, partials = pl.pallas_call(
            partial(_grad_energy_kernel, valid_rows=valid),
            out_shape=(jax.ShapeDtypeStruct((rows, width), x.dtype),
                       jax.ShapeDtypeStruct((grid_r, width), jnp.float32)),
            grid_spec=pltpu.PrefetchScalarGridSpec(
                num_scalar_prefetch=0, grid=(grid_r,),
                in_specs=[blk, blk],
                out_specs=(blk, pl.BlockSpec((1, width), lambda i: (i, 0)))),
            compiler_params=pltpu.CompilerParams(
                dimension_semantics=("parallel",),
                vmem_limit_bytes=_vmem_limit(3, tile_r, width, itemsize)),
        )(x2, f2)
        total = total + jnp.sum(partials)
        if not tail:
            return g.reshape(x.shape), 0.5 * total
        outs.append(g.reshape(-1))
    if tail:
        xt = flat_x[bulk:].astype(jnp.float32)
        ft = flat_f[bulk:].astype(jnp.float32)
        d = xt - ft
        outs.append(d.astype(x.dtype))
        total = total + jnp.sum(d * d)
    return jnp.concatenate(outs).reshape(x.shape), 0.5 * total


# ---------------------------------------------------------------------------
# Module mirror
# ---------------------------------------------------------------------------
class DatatermPallas:
    """Mirror of the abstract PyTorch `Dataterm` base class.

    `config` is unused (the torch __init__ registers no parameters).
    The concrete L2-fidelity math backing energy/prox/grad runs in Pallas.
    """

    def __init__(self, config=None):
        self.config = config  # no parameters, matching the torch __init__

    def forward(self, x, *args):
        # TODO(synk): abstract in the reference module -- no forward semantics
        # exist to translate; kept as NotImplementedError exactly like torch.
        raise NotImplementedError

    def __call__(self, x, *args):
        return self.forward(x, *args)

    def energy(self, x, f):
        return _energy_impl(x, f)

    def grad(self, x, f):
        return _grad_impl(x, f)

    def prox(self, x, f, tau=1.0):
        tau = jnp.asarray(tau, dtype=jnp.float32)
        # [tau/(1+tau), 1/(1+tau)] -> kernel needs no per-element divide;
        # traced values, so changing tau never recompiles.
        coef = jnp.stack([tau, jnp.ones((), jnp.float32)]) / (1.0 + tau)
        return _prox_impl(x, f, coef)

    def grad_and_energy(self, x, f):
        # fused: one pass over x, f for both results (halves HBM traffic)
        return _grad_energy_impl(x, f)


# ---------------------------------------------------------------------------
# Demo / self-check
# ---------------------------------------------------------------------------
if __name__ == "__main__":
    key = jax.random.PRNGKey(0)
    dt = DatatermPallas(config=None)

    def run_checks(idx, shape):
        kx, kf = jax.random.split(jax.random.fold_in(key, idx))
        x = jax.random.normal(kx, shape, dtype=jnp.float32)
        f = jax.random.normal(kf, shape, dtype=jnp.float32)

        g = jax.block_until_ready(dt.grad(x, f))
        p = jax.block_until_ready(dt.prox(x, f, tau=0.5))
        e = jax.block_until_ready(dt.energy(x, f))
        g2, e2 = dt.grad_and_energy(x, f)
        g2 = jax.block_until_ready(g2)
        e2 = jax.block_until_ready(e2)

        g_ref = x - f
        p_ref = (x + 0.5 * f) / 1.5
        e_ref = 0.5 * jnp.sum((x - f) ** 2)

        assert g.shape == shape and p.shape == shape and g2.shape == shape
        assert jnp.allclose(g, g_ref, atol=1e-5), f"grad mismatch {shape}"
        assert jnp.allclose(p, p_ref, atol=1e-5), f"prox mismatch {shape}"
        assert jnp.allclose(e, e_ref, rtol=1e-4, atol=1e-3), f"energy mismatch {shape}"
        assert jnp.allclose(g2, g_ref, atol=1e-5), f"fused grad mismatch {shape}"
        assert jnp.allclose(e2, e_ref, rtol=1e-4, atol=1e-3), f"fused energy mismatch {shape}"

    # Primary small NCHW case (single row band).
    run_checks(0, (2, 4, 16, 16))
    # < 128 elements: pure tail (plain jnp) path, no kernel launch.
    run_checks(1, (3, 5, 7))
    # 385 elements: 128-aligned bulk kernel + 1-element tail.
    run_checks(2, (5, 7, 11))
    # ~4 MiB: multi-step grid, megacore split, ragged last row band (masked
    # reduction and dropped OOB elementwise writes).
    run_checks(3, (2, 4, 384, 352))

    # different tau reuses the same compiled kernel (coef is a traced SMEM arg)
    kx, kf = jax.random.split(jax.random.fold_in(key, 7))
    x = jax.random.normal(kx, (2, 4, 16, 16), dtype=jnp.float32)
    f = jax.random.normal(kf, (2, 4, 16, 16), dtype=jnp.float32)
    p2 = jax.block_until_ready(dt.prox(x, f, tau=0.25))
    assert jnp.allclose(p2, (x + 0.25 * f) / 1.25, atol=1e-5), "prox(tau=0.25) mismatch"

    # forward must behave like the abstract torch module
    try:
        dt(x)
        raise AssertionError("forward should be abstract")
    except NotImplementedError:
        pass

    print("KERNEL_OK")
</pallas_src>

<mosaic_0001>
module attributes {stable_mosaic.version = 11 : i64} {
  func.func @_grad_kernel(%arg0: i32, %arg1: memref<1x2048xf32, #tpu.memory_space<vmem>>, %arg2: memref<1x2048xf32, #tpu.memory_space<vmem>>, %arg3: memref<1x2048xf32, #tpu.memory_space<vmem>>) attributes {dimension_semantics = [#tpu.dimension_semantics<parallel>], iteration_bounds = array<i64: 1>, scalar_prefetch = 0 : i64, scratch_operands = 0 : i64, tpu.core_type = #tpu.core_type<tc>, window_params = [{transform_indices = @transform_0, window_bounds = array<i64: 1, 2048>}, {transform_indices = @transform_1, window_bounds = array<i64: 1, 2048>}, {transform_indices = @transform_2, window_bounds = array<i64: 1, 2048>}]} {
    %c0 = arith.constant 0 : index
    %c0_0 = arith.constant 0 : index
    %0 = vector.load %arg1[%c0, %c0_0] : memref<1x2048xf32, #tpu.memory_space<vmem>>, vector<1x2048xf32>
    %c0_1 = arith.constant 0 : index
    %c0_2 = arith.constant 0 : index
    %1 = vector.load %arg2[%c0_1, %c0_2] : memref<1x2048xf32, #tpu.memory_space<vmem>>, vector<1x2048xf32>
    %2 = arith.subf %0, %1 : vector<1x2048xf32>
    %c0_3 = arith.constant 0 : index
    %c0_4 = arith.constant 0 : index
    %3 = vector.load %arg3[%c0_3, %c0_4] : memref<1x2048xf32, #tpu.memory_space<vmem>>, vector<1x2048xf32>
    tpu.vector_store %arg3[%c0_3, %c0_4], %2 {strides = array<i32>} : memref<1x2048xf32, #tpu.memory_space<vmem>>, vector<1x2048xf32>,
    return
  }
  func.func @transform_0(%arg0: i32) -> (i32, i32) {
    %c0_i32 = arith.constant 0 : i32
    %c0_i32_0 = arith.constant 0 : i32
    return %arg0, %c0_i32 : i32, i32
  }
  func.func @transform_1(%arg0: i32) -> (i32, i32) {
    %c0_i32 = arith.constant 0 : i32
    %c0_i32_0 = arith.constant 0 : i32
    return %arg0, %c0_i32 : i32, i32
  }
  func.func @transform_2(%arg0: i32) -> (i32, i32) {
    %c0_i32 = arith.constant 0 : i32
    %c0_i32_0 = arith.constant 0 : i32
    return %arg0, %c0_i32 : i32, i32
  }
}

</mosaic_0001>

<bundles_post_ra>
// kernel: _grad_impl.1
= control target key start
LH: loop header
LB: loop body
LE: loop exit
PB: predicated region body
PF: predicated region fallthrough
CT: control target
= control target key end

     0   :  { %s56_s0 = inlined_call_operand.vmem [shape: f32[1,2048], index: 0, kind: input, shape index: {}]   ;;  %s57_s1 = inlined_call_operand.vmem [shape: f32[1,2048], index: 1, kind: input, shape index: {}]   ;;  %s58_s2 = inlined_call_operand.vmem [shape: f32[1,2048], index: 2, kind: output, shape index: {}]  }
   0x1   :  { %v11_v0 = vld [vmem:[%s56_s0] sm:$0xff]  ;;  %v12_v2 = vld [vmem:[%s56_s0 + $0x8] sm:$0xff] }
   0x2   :  { %v13_v1 = vld [vmem:[%s57_s1] sm:$0xff]  ;;  %v14_v4 = vld [vmem:[%s57_s1 + $0x8] sm:$0xff] }
   0x3   :  { %v15_v3 = vsub.f32 %v11_v0, %v13_v1  ;;  %v16_v5 = vsub.f32 %v12_v2, %v14_v4 }
   0x5   :  { %17 = vst [vmem:[%s58_s2] sm:$0xff] %v15_v3  ;;  %18 = vst [vmem:[%s58_s2 + $0x8] sm:$0xff] %v16_v5 }

</bundles_post_ra>
